<compile_context>
chip_gen: v7x
topology: tpu7x:2x2x1
jax: 0.10.0
libtpu: 0.0.40
codegen_flags: <defaults>
</compile_context>

<pallas_src>
import functools

import jax
import jax.numpy as jnp
from jax.experimental import pallas as pl
from jax.experimental.pallas import tpu as pltpu


# ---------------------------------------------------------------------------
# Interpolation-weight matrices (built once in the wrapper, plain JAX).
# ---------------------------------------------------------------------------
def _bilinear_weight_matrix(new_size: int, old_size: int) -> jnp.ndarray:
    """(new_size, old_size) row-stochastic bilinear interpolation matrix.

    Matches PyTorch `interpolate(mode='bilinear', align_corners=False)`:
      src = scale * (dst + 0.5) - 0.5, clamped to >= 0; neighbors clamped.
    """
    scale = old_size / new_size
    dst = jnp.arange(new_size, dtype=jnp.float32)
    src = jnp.maximum(scale * (dst + 0.5) - 0.5, 0.0)
    x0 = jnp.minimum(jnp.floor(src).astype(jnp.int32), old_size - 1)
    x1 = jnp.minimum(x0 + 1, old_size - 1)
    lam = src - x0.astype(jnp.float32)
    rows = jnp.arange(new_size)
    w = jnp.zeros((new_size, old_size), jnp.float32)
    w = w.at[rows, x0].add(1.0 - lam)
    w = w.at[rows, x1].add(lam)
    return w


# ---------------------------------------------------------------------------
# Pallas kernel: resize `bsize` planes per grid step (all compute f32).
# ---------------------------------------------------------------------------
def _resize_kernel(x_ref, wh_ref, wwt_ref, o_ref, tmp_ref, *,
                   bsize: int, old_h: int, ho_pad: int,
                   new_h: int, hn_pad: int, h_first: bool):
    # x_ref   : (bsize, old_h, old_w)   input dtype
    # wh_ref  : (new_h, old_h)          f32 row-interp matrix
    # wwt_ref : (old_w, w_pad)          f32 col-interp matrix^T, zero-padded lanes
    # o_ref   : (bsize*hn_pad, w_pad)   merged 2-D, lane/sublane-dense output
    # tmp_ref : f32 VMEM scratch: (bsize*hn_pad, old_w) if h_first
    #                              else (bsize*ho_pad, w_pad)
    if h_first:
        # Pass 1 (per plane): contract H.  Row-padded scratch keeps every
        # plane slot sublane (8) aligned so pass 2 can fold across planes.
        for b in range(bsize):
            r0 = b * hn_pad
            tmp_ref[pl.ds(r0, new_h), :] = jnp.dot(
                wh_ref[...], x_ref[b].astype(jnp.float32),
                preferred_element_type=jnp.float32)
            if hn_pad != new_h:
                # Zero pad rows so the folded matmul never touches stale VMEM.
                tmp_ref[pl.ds(r0 + new_h, hn_pad - new_h), :] = jnp.zeros(
                    (hn_pad - new_h, tmp_ref.shape[1]), jnp.float32)
        # Pass 2 (folded across all planes): one MXU matmul, one dense store.
        o_ref[...] = jnp.dot(
            tmp_ref[...], wwt_ref[...],
            preferred_element_type=jnp.float32).astype(o_ref.dtype)
    else:
        # Pass 1 (per plane): contract W into row-padded scratch.
        for b in range(bsize):
            tmp_ref[pl.ds(b * ho_pad, old_h), :] = jnp.dot(
                x_ref[b].astype(jnp.float32), wwt_ref[...],
                preferred_element_type=jnp.float32)
        # Pass 2 (per plane): contract H, store straight to the merged output
        # at sublane-aligned offsets (lane-dense stores, no copy loop).
        for b in range(bsize):
            o_ref[pl.ds(b * hn_pad, new_h), :] = jnp.dot(
                wh_ref[...], tmp_ref[pl.ds(b * ho_pad, old_h), :],
                preferred_element_type=jnp.float32).astype(o_ref.dtype)


# ---------------------------------------------------------------------------
# Wrapper
# ---------------------------------------------------------------------------
@functools.partial(jax.jit, static_argnames=("edge_size", "single_buffer_weights"))
def _long_edge_resize_impl(image, edge_size, single_buffer_weights):
    """image: (N, C, H, W) -> (N, C, H_new, W_new); long edge -> edge_size."""
    n, c, old_h, old_w = image.shape

    # Exact size logic from LongEdgeResize.forward (static: shapes are known).
    if old_h > old_w:
        new_h = edge_size
        new_w = int(new_h / old_h * old_w)
    else:
        new_w = edge_size
        new_h = int(new_w / old_w * old_h)

    # Padded geometry: lane-dense output (128-multiple width), sublane-aligned
    # per-plane row slots (8-multiple) so merged/folded matmuls stay aligned.
    w_pad = -(-new_w // 128) * 128
    hn_pad = -(-new_h // 8) * 8
    ho_pad = -(-old_h // 8) * 8

    # Static choice of pass order: do the cheaper contraction first.
    cost_h_first = new_h * old_h * old_w + new_h * old_w * w_pad
    cost_w_first = old_h * old_w * w_pad + new_h * old_h * w_pad
    h_first = cost_h_first <= cost_w_first

    # f32 interpolation weights (parity with torchvision's f32 resize; the
    # extra MXU passes are hidden under the HBM-bound DMA).
    wh = _bilinear_weight_matrix(new_h, old_h)                      # (Hn, Ho)
    wwt = _bilinear_weight_matrix(new_w, old_w).T                   # (Wo, Wn)
    if w_pad != new_w:
        wwt = jnp.pad(wwt, ((0, 0), (0, w_pad - new_w)))            # (Wo, Wp)

    nc = n * c
    out_dtype = (image.dtype if jnp.issubdtype(image.dtype, jnp.floating)
                 else jnp.float32)
    # TODO(synk): integer inputs are returned as float32 (torchvision rounds
    # back to the integer dtype); add a rounding epilogue if exact parity for
    # uint8 tensors is required.
    in_item = image.dtype.itemsize
    out_item = jnp.dtype(out_dtype).itemsize

    if h_first:
        scr_rows, scr_cols = hn_pad, old_w
    else:
        scr_rows, scr_cols = ho_pad, w_pad

    weight_bufs = 1 if single_buffer_weights else 2

    def est_vmem(b):
        return (2 * b * old_h * old_w * in_item              # input blocks (x2 buf)
                + 2 * b * hn_pad * w_pad * out_item          # output blocks (x2 buf)
                + b * scr_rows * scr_cols * 4                # f32 scratch
                + b * hn_pad * w_pad * 4                     # staged f32 dot result
                + weight_bufs * (new_h * old_h + old_w * w_pad) * 4)

    # VMEM budget from the part we run on (v5e/v6e: 128 MiB -> ~48 MiB budget;
    # v7x: 64 MiB per TC -> ~24 MiB budget).
    try:
        vmem_cap = int(pltpu.get_tpu_info().vmem_capacity_bytes)
    except Exception:                                        # pragma: no cover
        vmem_cap = 64 * 1024 * 1024                          # conservative (v7x)
    budget = max(16 * 1024 * 1024, vmem_cap * 3 // 8)

    # Keep >= ~4 grid steps when possible so v7x's two TensorCores balance;
    # cap the Python-unrolled per-plane loop at 32 for compile time.
    min_steps = 4 if nc >= 8 else (2 if nc >= 2 else 1)
    bcap = min(32, max(1, nc // min_steps))
    bsize = 1
    for b in range(1, bcap + 1):
        if est_vmem(b) <= budget:
            bsize = b
    # TODO(synk): planes so large that est_vmem(1) > budget (e.g. >3k x 3k f32
    # on v7x) would need a second "arbitrary" grid axis striping the first
    # pass's contraction dim with a pl.when-zeroed accumulator.

    nc_pad = -(-nc // bsize) * bsize
    x = image.reshape(nc, old_h, old_w)
    if nc_pad != nc:
        x = jnp.pad(x, ((0, nc_pad - nc), (0, 0), (0, 0)))

    grid = (nc_pad // bsize,)
    flops_per_plane = 2 * (cost_h_first if h_first else cost_w_first)
    cost = pl.CostEstimate(
        flops=int(nc_pad * flops_per_plane),
        transcendentals=0,
        bytes_accessed=int(nc_pad * (old_h * old_w * in_item
                                     + hn_pad * w_pad * out_item)
                           + (new_h * old_h + old_w * w_pad) * 4),
    )
    vmem_limit = int(min(vmem_cap * 3 // 4,
                         max(32 * 1024 * 1024, est_vmem(bsize) * 2)))

    weight_spec_kwargs = ({"pipeline_mode": pl.Buffered(1)}
                          if single_buffer_weights else {})

    kernel = functools.partial(
        _resize_kernel, bsize=bsize, old_h=old_h, ho_pad=ho_pad,
        new_h=new_h, hn_pad=hn_pad, h_first=h_first)

    out2d = pl.pallas_call(
        kernel,
        out_shape=jax.ShapeDtypeStruct((nc_pad * hn_pad, w_pad), out_dtype),
        grid_spec=pltpu.PrefetchScalarGridSpec(
            num_scalar_prefetch=0,
            grid=grid,
            in_specs=[
                pl.BlockSpec((bsize, old_h, old_w), lambda i: (i, 0, 0)),
                # Grid-invariant weight blocks: constant index_map (fetched
                # once), single-buffered when the build supports Buffered(1).
                pl.BlockSpec((new_h, old_h), lambda i: (0, 0),
                             **weight_spec_kwargs),
                pl.BlockSpec((old_w, w_pad), lambda i: (0, 0),
                             **weight_spec_kwargs),
            ],
            out_specs=pl.BlockSpec((bsize * hn_pad, w_pad), lambda i: (i, 0)),
            scratch_shapes=[pltpu.VMEM((bsize * scr_rows, scr_cols),
                                       jnp.float32)],
        ),
        compiler_params=pltpu.CompilerParams(
            dimension_semantics=("parallel",),
            vmem_limit_bytes=vmem_limit,
        ),
        cost_estimate=cost,
    )(x, wh, wwt)

    out = out2d.reshape(nc_pad, hn_pad, w_pad)[:nc, :new_h, :new_w]
    return out.reshape(n, c, new_h, new_w)


_SINGLE_BUFFER_WEIGHTS = [True]


def long_edge_resize(image, edge_size):
    """Public entry point.  Tries single-buffered weight blocks first and
    falls back to the default double-buffered pipeline if the current jax
    build rejects `pl.Buffered(1)` for top-level pallas_call specs."""
    try:
        return _long_edge_resize_impl(
            image, edge_size, single_buffer_weights=_SINGLE_BUFFER_WEIGHTS[0])
    except Exception:
        if not _SINGLE_BUFFER_WEIGHTS[0]:
            raise
        _SINGLE_BUFFER_WEIGHTS[0] = False
        return _long_edge_resize_impl(image, edge_size,
                                      single_buffer_weights=False)


# ---------------------------------------------------------------------------
# Pure-JAX reference (f32 separable bilinear) + demo / smoke test
# ---------------------------------------------------------------------------
def _reference_resize(image, edge_size):
    _, _, h, w = image.shape
    if h > w:
        nh = edge_size
        nw = int(nh / h * w)
    else:
        nw = edge_size
        nh = int(nw / w * h)
    wh = _bilinear_weight_matrix(nh, h)
    ww = _bilinear_weight_matrix(nw, w)
    return jnp.einsum("ph,nchw,qw->ncpq", wh, image.astype(jnp.float32), ww,
                      precision=jax.lax.Precision.HIGHEST)


if __name__ == "__main__":
    key = jax.random.PRNGKey(0)
    # Cases chosen to exercise the static code paths:
    #   1) H long, downscale  -> H-first, aligned rows, bsize=2, 4 grid steps
    #   2) W long, upscale    -> W-first, old_h/new_h both need row padding
    #   3) W long, upscale    -> W-first, aligned rows, bsize=2
    #   4) H long, downscale  -> H-first with padded scratch rows (new_h=10)
    cases = [
        ((2, 4, 16, 12), 8),
        ((1, 3, 10, 24), 64),
        ((2, 2, 16, 32), 64),
        ((1, 2, 20, 12), 10),
    ]
    for idx, (shape, edge) in enumerate(cases):
        key, sub = jax.random.split(key)
        image = jax.random.uniform(sub, shape, dtype=jnp.float32)
        out = jax.block_until_ready(long_edge_resize(image, edge))
        ref = _reference_resize(image, edge)
        assert out.shape == ref.shape, (idx, out.shape, ref.shape)
        assert jnp.allclose(out, ref, atol=1e-2), (
            idx, float(jnp.max(jnp.abs(out - ref))))
    print("KERNEL_OK")
</pallas_src>

<mosaic_0001>
module attributes {stable_mosaic.version = 11 : i64} {
  func.func @_resize_kernel(%arg0: i32, %arg1: memref<2x16x12xf32, #tpu.memory_space<vmem>>, %arg2: memref<8x16xf32, #tpu.memory_space<vmem>>, %arg3: memref<12x128xf32, #tpu.memory_space<vmem>>, %arg4: memref<16x128xf32, #tpu.memory_space<vmem>>, %arg5: memref<16x12xf32, #tpu.memory_space<vmem>>) attributes {dimension_semantics = [#tpu.dimension_semantics<parallel>], iteration_bounds = array<i64: 4>, scalar_prefetch = 0 : i64, scratch_operands = 1 : i64, tpu.core_type = #tpu.core_type<tc>, window_params = [{transform_indices = @transform_0, window_bounds = array<i64: 2, 16, 12>}, {pipeline_mode = #tpu.pipeline_mode<synchronous>, transform_indices = @transform_1, window_bounds = array<i64: 8, 16>}, {pipeline_mode = #tpu.pipeline_mode<synchronous>, transform_indices = @transform_2, window_bounds = array<i64: 12, 128>}, {transform_indices = @transform_3, window_bounds = array<i64: 16, 128>}]} {
    %c0 = arith.constant 0 : index
    %c0_0 = arith.constant 0 : index
    %0 = vector.load %arg2[%c0, %c0_0] : memref<8x16xf32, #tpu.memory_space<vmem>>, vector<8x16xf32>
    %c0_1 = arith.constant 0 : index
    %c0_2 = arith.constant 0 : index
    %c0_3 = arith.constant 0 : index
    %1 = vector.load %arg1[%c0_1, %c0_2, %c0_3] : memref<2x16x12xf32, #tpu.memory_space<vmem>>, vector<1x16x12xf32>
    %2 = vector.shape_cast %1 : vector<1x16x12xf32> to vector<16x12xf32>
    %cst = arith.constant dense<0.000000e+00> : vector<8x12xf32>
    %3 = tpu.matmul %0, %2, %cst {dimension_numbers = #tpu.dot_dimension_numbers<[1], [0], [0], [1], [0, 0, 1, 1], [], []>} : vector<8x16xf32>, vector<16x12xf32>, vector<8x12xf32> -> vector<8x12xf32>
    %c0_4 = arith.constant 0 : index
    %c0_5 = arith.constant 0 : index
    %4 = vector.load %arg5[%c0_4, %c0_5] : memref<16x12xf32, #tpu.memory_space<vmem>>, vector<8x12xf32>
    tpu.vector_store %arg5[%c0_4, %c0_5], %3 {strides = array<i32>} : memref<16x12xf32, #tpu.memory_space<vmem>>, vector<8x12xf32>,
    %c0_6 = arith.constant 0 : index
    %c0_7 = arith.constant 0 : index
    %5 = vector.load %arg2[%c0_6, %c0_7] : memref<8x16xf32, #tpu.memory_space<vmem>>, vector<8x16xf32>
    %c1 = arith.constant 1 : index
    %c0_8 = arith.constant 0 : index
    %c0_9 = arith.constant 0 : index
    %6 = vector.load %arg1[%c1, %c0_8, %c0_9] : memref<2x16x12xf32, #tpu.memory_space<vmem>>, vector<1x16x12xf32>
    %7 = vector.shape_cast %6 : vector<1x16x12xf32> to vector<16x12xf32>
    %cst_10 = arith.constant dense<0.000000e+00> : vector<8x12xf32>
    %8 = tpu.matmul %5, %7, %cst_10 {dimension_numbers = #tpu.dot_dimension_numbers<[1], [0], [0], [1], [0, 0, 1, 1], [], []>} : vector<8x16xf32>, vector<16x12xf32>, vector<8x12xf32> -> vector<8x12xf32>
    %c8 = arith.constant 8 : index
    %c0_11 = arith.constant 0 : index
    %9 = vector.load %arg5[%c8, %c0_11] : memref<16x12xf32, #tpu.memory_space<vmem>>, vector<8x12xf32>
    tpu.vector_store %arg5[%c8, %c0_11], %8 {strides = array<i32>} : memref<16x12xf32, #tpu.memory_space<vmem>>, vector<8x12xf32>,
    %c0_12 = arith.constant 0 : index
    %c0_13 = arith.constant 0 : index
    %10 = vector.load %arg5[%c0_12, %c0_13] : memref<16x12xf32, #tpu.memory_space<vmem>>, vector<16x12xf32>
    %c0_14 = arith.constant 0 : index
    %c0_15 = arith.constant 0 : index
    %11 = vector.load %arg3[%c0_14, %c0_15] : memref<12x128xf32, #tpu.memory_space<vmem>>, vector<12x128xf32>
    %cst_16 = arith.constant dense<0.000000e+00> : vector<16x128xf32>
    %12 = tpu.matmul %10, %11, %cst_16 {dimension_numbers = #tpu.dot_dimension_numbers<[1], [0], [0], [1], [0, 0, 1, 1], [], []>} : vector<16x12xf32>, vector<12x128xf32>, vector<16x128xf32> -> vector<16x128xf32>
    %c0_17 = arith.constant 0 : index
    %c0_18 = arith.constant 0 : index
    %13 = vector.load %arg4[%c0_17, %c0_18] : memref<16x128xf32, #tpu.memory_space<vmem>>, vector<16x128xf32>
    tpu.vector_store %arg4[%c0_17, %c0_18], %12 {strides = array<i32>} : memref<16x128xf32, #tpu.memory_space<vmem>>, vector<16x128xf32>,
    return
  }
  func.func @transform_0(%arg0: i32) -> (i32, i32, i32) {
    %c0_i32 = arith.constant 0 : i32
    %c0_i32_0 = arith.constant 0 : i32
    %c0_i32_1 = arith.constant 0 : i32
    return %arg0, %c0_i32, %c0_i32_0 : i32, i32, i32
  }
  func.func @transform_1(%arg0: i32) -> (i32, i32) {
    %c0_i32 = arith.constant 0 : i32
    %c0_i32_0 = arith.constant 0 : i32
    %c0_i32_1 = arith.constant 0 : i32
    return %c0_i32, %c0_i32_0 : i32, i32
  }
  func.func @transform_2(%arg0: i32) -> (i32, i32) {
    %c0_i32 = arith.constant 0 : i32
    %c0_i32_0 = arith.constant 0 : i32
    %c0_i32_1 = arith.constant 0 : i32
    return %c0_i32, %c0_i32_0 : i32, i32
  }
  func.func @transform_3(%arg0: i32) -> (i32, i32) {
    %c0_i32 = arith.constant 0 : i32
    %c0_i32_0 = arith.constant 0 : i32
    return %arg0, %c0_i32 : i32, i32
  }
}

module attributes {stable_mosaic.version = 11 : i64} {
  func.func @_resize_kernel(%arg0: i32, %arg1: memref<2x16x12xf32, #tpu.memory_space<vmem>>, %arg2: memref<8x16xf32, #tpu.memory_space<vmem>>, %arg3: memref<12x128xf32, #tpu.memory_space<vmem>>, %arg4: memref<16x128xf32, #tpu.memory_space<vmem>>, %arg5: memref<16x12xf32, #tpu.memory_space<vmem>>) attributes {dimension_semantics = [#tpu.dimension_semantics<parallel>], iteration_bounds = array<i64: 4>, scalar_prefetch = 0 : i64, scratch_operands = 1 : i64, tpu.core_type = #tpu.core_type<tc>, window_params = [{transform_indices = @transform_0, window_bounds = array<i64: 2, 16, 12>}, {pipeline_mode = #tpu.pipeline_mode<synchronous>, transform_indices = @transform_1, window_bounds = array<i64: 8, 16>}, {pipeline_mode = #tpu.pipeline_mode<synchronous>, transform_indices = @transform_2, window_bounds = array<i64: 12, 128>}, {transform_indices = @transform_3, window_bounds = array<i64: 16, 128>}]} {
    %c0 = arith.constant 0 : index
    %c0_0 = arith.constant 0 : index
    %0 = vector.load %arg2[%c0, %c0_0] : memref<8x16xf32, #tpu.memory_space<vmem>>, vector<8x16xf32>
    %c0_1 = arith.constant 0 : index
    %c0_2 = arith.constant 0 : index
    %c0_3 = arith.constant 0 : index
    %1 = vector.load %arg1[%c0_1, %c0_2, %c0_3] : memref<2x16x12xf32, #tpu.memory_space<vmem>>, vector<1x16x12xf32>
    %2 = vector.shape_cast %1 : vector<1x16x12xf32> to vector<16x12xf32>
    %cst = arith.constant dense<0.000000e+00> : vector<8x12xf32>
    %3 = tpu.matmul %0, %2, %cst {dimension_numbers = #tpu.dot_dimension_numbers<[1], [0], [0], [1], [0, 0, 1, 1], [], []>} : vector<8x16xf32>, vector<16x12xf32>, vector<8x12xf32> -> vector<8x12xf32>
    %c0_4 = arith.constant 0 : index
    %c0_5 = arith.constant 0 : index
    %4 = vector.load %arg5[%c0_4, %c0_5] : memref<16x12xf32, #tpu.memory_space<vmem>>, vector<8x12xf32>
    tpu.vector_store %arg5[%c0_4, %c0_5], %3 {strides = array<i32>} : memref<16x12xf32, #tpu.memory_space<vmem>>, vector<8x12xf32>,
    %c0_6 = arith.constant 0 : index
    %c0_7 = arith.constant 0 : index
    %5 = vector.load %arg2[%c0_6, %c0_7] : memref<8x16xf32, #tpu.memory_space<vmem>>, vector<8x16xf32>
    %c1 = arith.constant 1 : index
    %c0_8 = arith.constant 0 : index
    %c0_9 = arith.constant 0 : index
    %6 = vector.load %arg1[%c1, %c0_8, %c0_9] : memref<2x16x12xf32, #tpu.memory_space<vmem>>, vector<1x16x12xf32>
    %7 = vector.shape_cast %6 : vector<1x16x12xf32> to vector<16x12xf32>
    %cst_10 = arith.constant dense<0.000000e+00> : vector<8x12xf32>
    %8 = tpu.matmul %5, %7, %cst_10 {dimension_numbers = #tpu.dot_dimension_numbers<[1], [0], [0], [1], [0, 0, 1, 1], [], []>} : vector<8x16xf32>, vector<16x12xf32>, vector<8x12xf32> -> vector<8x12xf32>
    %c8 = arith.constant 8 : index
    %c0_11 = arith.constant 0 : index
    %9 = vector.load %arg5[%c8, %c0_11] : memref<16x12xf32, #tpu.memory_space<vmem>>, vector<8x12xf32>
    tpu.vector_store %arg5[%c8, %c0_11], %8 {strides = array<i32>} : memref<16x12xf32, #tpu.memory_space<vmem>>, vector<8x12xf32>,
    %c0_12 = arith.constant 0 : index
    %c0_13 = arith.constant 0 : index
    %10 = vector.load %arg5[%c0_12, %c0_13] : memref<16x12xf32, #tpu.memory_space<vmem>>, vector<16x12xf32>
    %c0_14 = arith.constant 0 : index
    %c0_15 = arith.constant 0 : index
    %11 = vector.load %arg3[%c0_14, %c0_15] : memref<12x128xf32, #tpu.memory_space<vmem>>, vector<12x128xf32>
    %cst_16 = arith.constant dense<0.000000e+00> : vector<16x128xf32>
    %12 = tpu.matmul %10, %11, %cst_16 {dimension_numbers = #tpu.dot_dimension_numbers<[1], [0], [0], [1], [0, 0, 1, 1], [], []>} : vector<16x12xf32>, vector<12x128xf32>, vector<16x128xf32> -> vector<16x128xf32>
    %c0_17 = arith.constant 0 : index
    %c0_18 = arith.constant 0 : index
    %13 = vector.load %arg4[%c0_17, %c0_18] : memref<16x128xf32, #tpu.memory_space<vmem>>, vector<16x128xf32>
    tpu.vector_store %arg4[%c0_17, %c0_18], %12 {strides = array<i32>} : memref<16x128xf32, #tpu.memory_space<vmem>>, vector<16x128xf32>,
    return
  }
  func.func @transform_0(%arg0: i32) -> (i32, i32, i32) {
    %c0_i32 = arith.constant 0 : i32
    %c0_i32_0 = arith.constant 0 : i32
    %c0_i32_1 = arith.constant 0 : i32
    return %arg0, %c0_i32, %c0_i32_0 : i32, i32, i32
  }
  func.func @transform_1(%arg0: i32) -> (i32, i32) {
    %c0_i32 = arith.constant 0 : i32
    %c0_i32_0 = arith.constant 0 : i32
    %c0_i32_1 = arith.constant 0 : i32
    return %c0_i32, %c0_i32_0 : i32, i32
  }
  func.func @transform_2(%arg0: i32) -> (i32, i32) {
    %c0_i32 = arith.constant 0 : i32
    %c0_i32_0 = arith.constant 0 : i32
    %c0_i32_1 = arith.constant 0 : i32
    return %c0_i32, %c0_i32_0 : i32, i32
  }
  func.func @transform_3(%arg0: i32) -> (i32, i32) {
    %c0_i32 = arith.constant 0 : i32
    %c0_i32_0 = arith.constant 0 : i32
    return %arg0, %c0_i32 : i32, i32
  }
}

</mosaic_0001>

<bundles_post_ra>
// kernel: _long_edge_resize_impl.1
= control target key start
LH: loop header
LB: loop body
LE: loop exit
PB: predicated region body
PF: predicated region fallthrough
CT: control target
= control target key end

     0   :  { %s588_s12 = smov 0   ;;  %s618_s0 = inlined_call_operand.vmem [shape: f32[8,16,12], index: 0, kind: input, shape index: {}]   ;;  %s619_s1 = inlined_call_operand.vmem [shape: f32[8,16], index: 1, kind: input, shape index: {}]   ;;  %s620_s2 = inlined_call_operand.vmem [shape: f32[12,128], index: 2, kind: input, shape index: {}]   ;;  %s621_s3 = inlined_call_operand.vmem [shape: f32[64,128], index: 3, kind: output, shape index: {}]  }
   0x1 LB: > { %s481_s13 = sadd.s32 4294967295, %s562_s12   ;;  %p485_p0 = scmp.ge.s32.totalorder %s562_s12, 1  ;;  %s562_s12 = sphi %s588_s12, %s13_s12  }
   0x2   : > { %p139_p1 = scmp.lt.s32.totalorder %s562_s12, 5 }
   0x4   : > { %p140_p2 = pnand %p485_p0, %p139_p1 }
   0x5   : > { %s486_s14 = sshll.u32 (!%p140_p2), %s481_s13, 1  ;;  %v564_v0 = vmov (!%p140_p2), 0.0|0.0   ;;  %vm565_vm0 = vmmov (!%p140_p2), 0   ;;  %v566_v1 = vmov (!%p140_p2), 0.0   ;;  %v177_v8 = vld [vmem:[%s619_s1] sm:$0xff] (!%p140_p2)  ;;  %vm180_vm1 = vcmask (!%p140_p2), 130048  }
   0x6   : > { %143 = sbr.rel (%p140_p2) target bundleno = 457 (0x1c9), region = 32  ;;  %532 = vmatprep.subr.bf16.mxu0 (!%p140_p2), %v564_v0  ;;  %535 = vmatprep.subr.bf16.mxu1 (!%p140_p2), %v564_v0  ;;  %p165_p3 = scmp.lt.s32.totalorder (!%p140_p2), %s486_s14, 7  ;;  %v336_v9 = vld [vmem:[%s620_s2] sm:$0xff] (!%p140_p2)  ;;  %v337_v10 = vld [vmem:[%s620_s2 + $0x8] sm:$0xf] (!%p140_p2)  ;;  %vm344_vm2 = vcmask (!%p140_p2), 1043456  }
   0x7   : > { %515 = vmatprep.mubr.msk.f32.mxu0 (!%p140_p2), %vm565_vm0, %v566_v1  ;;  %522 = vmatprep.mubr.msk.f32.mxu1 (!%p140_p2), %vm565_vm0, %v566_v1  ;;  %v538_v11 = vpack.c.bf16 (!%p140_p2), %v337_v10, %v336_v9  ;;  %vm567_vm3 = vmmov (!%p140_p2), 1   ;;  %vm254_vm5 = vcmask (!%p140_p2), 97280  }
   0x8   : > { %vm539_vm4 = vmpackc.low (!%p140_p2), %vm344_vm2, %vm567_vm3 }
   0xd   : > { %s623_s14 = smov (!%p165_p3, %s486_s14), 7 }
   0xe   : > { %s500_s15 = sshll.u32 %s623_s14, 4  ;;  %s490_s25 = sshll.u32 %s623_s14, 3 }
   0xf   : > { %s169_s18 = scalar_lea.vmem %s618_s0, %s500_s15  ;;  %s175_s28 = scalar_lea.vmem %s621_s3, %s490_s25 }
  0x10   : > { %v178_v2 = vld [vmem:[%s169_s18] sm:$0xff]  ;;  %v179_v3 = vld [vmem:[%s169_s18 + $0x8] sm:$0xff]  ;;  %v492_v4 = vld [vmem:[%s169_s18 + $0x10] sm:$0xff] }
  0x11   : > { %v533_v5 = vpack.c.bf16 %v179_v3, %v178_v2  ;;  %v493_v6 = vld [vmem:[%s169_s18 + $0x18] sm:$0xff] }
  0x12   : > { %v536_v7 = vpack.c.bf16 %v493_v6, %v492_v4 }
  0x13   : > { %534 = vmatpush3.bf16.msra.mxu0 %v533_v5 }
  0x14   : > { %537 = vmatpush3.bf16.msra.mxu1 %v536_v7  ;;  %540 = vmatprep.subr.msk.bf16.mxu0 %vm539_vm4, %v538_v11 }
  0x16   : > { %516 = vmatmul.mubr.msk.f32.vlgmr.msra.gmra.mrb[0].mxu0 %vm180_vm1, %v177_v8 }
  0x17   : > { %523 = vmatmul.mubr.msk.f32.vlgmr.msra.gmra.mrb[0].mxu1 %vm180_vm1, %v177_v8  ;;  %543 = vmatpush3.bf16.msk.msra.mxu0 %vm539_vm4, %v538_v11 }
  0xe9   : > { %v250_v12 = vpop.f32.mrb[0].mxu0 }
  0xea   : > { %255 = vst.msk [vmem:[#allocation2] sm:$0xff] %vm254_vm5, %v250_v12  ;;  %v329_v13 = vpop.f32.mrb[0].mxu1  ;;  %v517_v14 = vpop.f32.mrb[1].mxu0 }
  0xeb   : > { %333 = vst.msk [vmem:[#allocation2 + $0x8] sm:$0xff] %vm254_vm5, %v329_v13  ;;  %v524_v15 = vpop.f32.mrb[1].mxu1 }
  0xf1   : > { %v334_v16 = vld [vmem:[#allocation2] sm:$0xff] }
  0xf2   : > { %529 = vmatprep.mubr.msk.f32.mxu0 %vm254_vm5, %v334_v16  ;;  %v335_v17 = vld [vmem:[#allocation2 + $0x8] sm:$0xff] }
  0xf3   : > { %530 = vmatmul.mubr.msk.f32.vlgmr.msra.gmra.mrb[2].mxu0 %vm254_vm5, %v335_v17 }
 0x1c6   : > { %v531_v18 = vpop.f32.mrb[2].mxu0 }
 0x1c7   : > { %v414_v19 = vpop.f32.mrb[3].mxu0  ;;  %424 = vst [vmem:[%s175_s28 + $0x8] sm:$0xff] %v531_v18 }
 0x1c8   : > { %423 = vst [vmem:[%s175_s28] sm:$0xff] %v414_v19 }
 0x1c9 PF: > { %s13_s12 = sadd.s32 1, %s562_s12  }
 0x1ca   : > { %p10_p4 = scmp.ge.s32.totalorder %s13_s12, 6  }
 0x1cc   :  { %12 = sbr.rel (!%p10_p4) target bundleno = 1 (0x1), region = 63 }

// kernel: _long_edge_resize_impl.1
= control target key start
LH: loop header
LB: loop body
LE: loop exit
PB: predicated region body
PF: predicated region fallthrough
CT: control target
= control target key end

     0   :  { %s588_s12 = smov 0   ;;  %s618_s0 = inlined_call_operand.vmem [shape: f32[8,16,12], index: 0, kind: input, shape index: {}]   ;;  %s619_s1 = inlined_call_operand.vmem [shape: f32[8,16], index: 1, kind: input, shape index: {}]   ;;  %s620_s2 = inlined_call_operand.vmem [shape: f32[12,128], index: 2, kind: input, shape index: {}]   ;;  %s621_s3 = inlined_call_operand.vmem [shape: f32[64,128], index: 3, kind: output, shape index: {}]  }
   0x1 LB: > { %s481_s13 = sadd.s32 4294967295, %s562_s12   ;;  %p485_p0 = scmp.ge.s32.totalorder %s562_s12, 1  ;;  %s562_s12 = sphi %s588_s12, %s13_s12  }
   0x2   : > { %p139_p1 = scmp.lt.s32.totalorder %s562_s12, 5 }
   0x4   : > { %p140_p2 = pnand %p485_p0, %p139_p1 }
   0x5   : > { %s486_s14 = sshll.u32 (!%p140_p2), %s481_s13, 1  ;;  %v564_v0 = vmov (!%p140_p2), 0.0|0.0   ;;  %vm565_vm0 = vmmov (!%p140_p2), 0   ;;  %v566_v1 = vmov (!%p140_p2), 0.0   ;;  %v177_v8 = vld [vmem:[%s619_s1] sm:$0xff] (!%p140_p2)  ;;  %vm180_vm1 = vcmask (!%p140_p2), 130048  }
   0x6   : > { %143 = sbr.rel (%p140_p2) target bundleno = 457 (0x1c9), region = 32  ;;  %532 = vmatprep.subr.bf16.mxu0 (!%p140_p2), %v564_v0  ;;  %535 = vmatprep.subr.bf16.mxu1 (!%p140_p2), %v564_v0  ;;  %p165_p3 = scmp.lt.s32.totalorder (!%p140_p2), %s486_s14, 7  ;;  %v336_v9 = vld [vmem:[%s620_s2] sm:$0xff] (!%p140_p2)  ;;  %v337_v10 = vld [vmem:[%s620_s2 + $0x8] sm:$0xf] (!%p140_p2)  ;;  %vm344_vm2 = vcmask (!%p140_p2), 1043456  }
   0x7   : > { %515 = vmatprep.mubr.msk.f32.mxu0 (!%p140_p2), %vm565_vm0, %v566_v1  ;;  %522 = vmatprep.mubr.msk.f32.mxu1 (!%p140_p2), %vm565_vm0, %v566_v1  ;;  %v538_v11 = vpack.c.bf16 (!%p140_p2), %v337_v10, %v336_v9  ;;  %vm567_vm3 = vmmov (!%p140_p2), 1   ;;  %vm254_vm5 = vcmask (!%p140_p2), 97280  }
   0x8   : > { %vm539_vm4 = vmpackc.low (!%p140_p2), %vm344_vm2, %vm567_vm3 }
   0xd   : > { %s623_s14 = smov (!%p165_p3, %s486_s14), 7 }
   0xe   : > { %s500_s15 = sshll.u32 %s623_s14, 4  ;;  %s490_s25 = sshll.u32 %s623_s14, 3 }
   0xf   : > { %s169_s18 = scalar_lea.vmem %s618_s0, %s500_s15  ;;  %s175_s28 = scalar_lea.vmem %s621_s3, %s490_s25 }
  0x10   : > { %v178_v2 = vld [vmem:[%s169_s18] sm:$0xff]  ;;  %v179_v3 = vld [vmem:[%s169_s18 + $0x8] sm:$0xff]  ;;  %v492_v4 = vld [vmem:[%s169_s18 + $0x10] sm:$0xff] }
  0x11   : > { %v533_v5 = vpack.c.bf16 %v179_v3, %v178_v2  ;;  %v493_v6 = vld [vmem:[%s169_s18 + $0x18] sm:$0xff] }
  0x12   : > { %v536_v7 = vpack.c.bf16 %v493_v6, %v492_v4 }
  0x13   : > { %534 = vmatpush3.bf16.msra.mxu0 %v533_v5 }
  0x14   : > { %537 = vmatpush3.bf16.msra.mxu1 %v536_v7  ;;  %540 = vmatprep.subr.msk.bf16.mxu0 %vm539_vm4, %v538_v11 }
  0x16   : > { %516 = vmatmul.mubr.msk.f32.vlgmr.msra.gmra.mrb[0].mxu0 %vm180_vm1, %v177_v8 }
  0x17   : > { %523 = vmatmul.mubr.msk.f32.vlgmr.msra.gmra.mrb[0].mxu1 %vm180_vm1, %v177_v8  ;;  %543 = vmatpush3.bf16.msk.msra.mxu0 %vm539_vm4, %v538_v11 }
  0xe9   : > { %v250_v12 = vpop.f32.mrb[0].mxu0 }
  0xea   : > { %255 = vst.msk [vmem:[#allocation2] sm:$0xff] %vm254_vm5, %v250_v12  ;;  %v329_v13 = vpop.f32.mrb[0].mxu1  ;;  %v517_v14 = vpop.f32.mrb[1].mxu0 }
  0xeb   : > { %333 = vst.msk [vmem:[#allocation2 + $0x8] sm:$0xff] %vm254_vm5, %v329_v13  ;;  %v524_v15 = vpop.f32.mrb[1].mxu1 }
  0xf1   : > { %v334_v16 = vld [vmem:[#allocation2] sm:$0xff] }
  0xf2   : > { %529 = vmatprep.mubr.msk.f32.mxu0 %vm254_vm5, %v334_v16  ;;  %v335_v17 = vld [vmem:[#allocation2 + $0x8] sm:$0xff] }
  0xf3   : > { %530 = vmatmul.mubr.msk.f32.vlgmr.msra.gmra.mrb[2].mxu0 %vm254_vm5, %v335_v17 }
 0x1c6   : > { %v531_v18 = vpop.f32.mrb[2].mxu0 }
 0x1c7   : > { %v414_v19 = vpop.f32.mrb[3].mxu0  ;;  %424 = vst [vmem:[%s175_s28 + $0x8] sm:$0xff] %v531_v18 }
 0x1c8   : > { %423 = vst [vmem:[%s175_s28] sm:$0xff] %v414_v19 }
 0x1c9 PF: > { %s13_s12 = sadd.s32 1, %s562_s12  }
 0x1ca   : > { %p10_p4 = scmp.ge.s32.totalorder %s13_s12, 6  }
 0x1cc   :  { %12 = sbr.rel (!%p10_p4) target bundleno = 1 (0x1), region = 63 }

</bundles_post_ra>
